<compile_context>
chip_gen: v7x
topology: tpu7x:2x2x1
jax: 0.10.0
libtpu: 0.0.40
codegen_flags: <defaults>
</compile_context>

<pallas_src>
import functools

import jax
import jax.numpy as jnp
from jax import lax
from jax.experimental import pallas as pl
from jax.experimental.pallas import tpu as pltpu


def _round_up(x, m):
    return ((x + m - 1) // m) * m


# ----------------------------------------------------------------------------
# Pallas kernel: fc1 -> GELU(exact) -> fc2, with the shared time2vec part of
# fc1 computed once per (n, t) pair.
# ----------------------------------------------------------------------------
def _ste_mlp_kernel(num_ref, enc_ref, w1r_ref, w1e_ref, b1_ref, w2_ref, b2_ref,
                    o_ref):
    """
    num_ref : (t, d)     raw numerical feature values           (io dtype)
    enc_ref : (t, F)     time2vec encoding (shared across d)    (io dtype)
    w1r_ref : (1, H)     row 0 of fc1 weight (raw-value row)    (f32)
    w1e_ref : (F, H)     rows 1..F of fc1 weight (encoding)     (f32)
    b1_ref  : (1, H)
    w2_ref  : (H, Ho)
    b2_ref  : (1, Ho)
    o_ref   : (t, d*Ho)  feature-major packed output rows
    """
    f32 = jnp.float32
    num = num_ref[...].astype(f32)                        # (t, d)
    enc = enc_ref[...].astype(f32)                        # (t, F)
    w1r = w1r_ref[...]                                    # (1, H)
    w2 = w2_ref[...]                                      # (H, Ho)
    b2 = b2_ref[...]                                      # (1, Ho)

    # Shared part of fc1: ONCE per (n, t) pair instead of once per row.
    proj = jnp.dot(enc, w1e_ref[...],
                   preferred_element_type=f32) + b1_ref[...]   # (t, H)

    d = num.shape[1]
    h_out = w2.shape[1]
    inv_sqrt2 = jnp.float32(0.7071067811865476)
    for j in range(d):                                    # small static unroll
        # equivalent to [num[:, j], enc] @ W1 + b1
        h = num[:, j:j + 1] * w1r + proj                  # (t, H)
        h = 0.5 * h * (1.0 + lax.erf(h * inv_sqrt2))      # exact GELU (torch default)
        o = jnp.dot(h, w2, preferred_element_type=f32) + b2
        o_ref[:, j * h_out:(j + 1) * h_out] = o.astype(o_ref.dtype)


def ste_dense_pallas(num2d, enc2d, w1, b1, w2, b2, *, t_nt=2048,
                     out_dtype=jnp.float32):
    """num2d: (NT, d), enc2d: (NT, F)  ->  (NT, d*Ho) packed embeddings."""
    nt, d = num2d.shape
    f = enc2d.shape[1]
    k, h = w1.shape
    ho = w2.shape[1]
    assert k == 1 + f, f"fc1 expects {1 + f} inputs, got weight with {k} rows"
    assert w2.shape[0] == h, "fc1/fc2 width mismatch"
    assert b1.shape == (1, h) and b2.shape == (1, ho)

    w1_row0 = w1[0:1, :]          # multiplies the raw feature value
    w1_enc = w1[1:, :]            # multiplies the shared time2vec encoding

    # Sublane granularity for the narrowest dtype in play (8 for f32, 16 bf16).
    min_item = min(jnp.dtype(num2d.dtype).itemsize, jnp.dtype(out_dtype).itemsize)
    gran = max(8, 32 // min_item)
    # Big tile (amortize per-step overhead) but keep >=2 grid steps when
    # possible so both v7x TensorCores get work.
    tile = max(gran, min(int(t_nt), _round_up(pl.cdiv(nt, 2), gran)))
    grid = (pl.cdiv(nt, tile),)

    out = pl.pallas_call(
        _ste_mlp_kernel,
        out_shape=jax.ShapeDtypeStruct((nt, d * ho), out_dtype),
        grid=grid,
        in_specs=[
            pl.BlockSpec((tile, d), lambda i: (i, 0)),    # raw features
            pl.BlockSpec((tile, f), lambda i: (i, 0)),    # time2vec encoding
            pl.BlockSpec((1, h), lambda i: (0, 0)),       # w1 row 0
            pl.BlockSpec((f, h), lambda i: (0, 0)),       # w1 rows 1..F
            pl.BlockSpec((1, h), lambda i: (0, 0)),       # b1
            pl.BlockSpec((h, ho), lambda i: (0, 0)),      # w2
            pl.BlockSpec((1, ho), lambda i: (0, 0)),      # b2
        ],
        out_specs=pl.BlockSpec((tile, d * ho), lambda i: (i, 0)),
        compiler_params=pltpu.CompilerParams(
            dimension_semantics=("parallel",)),
    )(num2d, enc2d, w1_row0, w1_enc, b1, w2, b2)
    return out


# ----------------------------------------------------------------------------
# STEmbedding forward (plain-JAX glue for the tiny frozen time2vec + slicing)
# ----------------------------------------------------------------------------
def st_embedding_forward(inputs, params, *, time_idx, feature_idx, n_frequencies,
                         io_dtype=jnp.float32, out_dtype=jnp.float32, t_nt=2048):
    """inputs: (N, T, F_t) float32 -> (N, T*d, output_dim)."""
    time = inputs[:, :, jnp.array(time_idx)]             # (N, T, n_time)
    num = inputs[:, :, jnp.array(feature_idx)]           # (N, T, d)

    # Frozen time2vec: 1 linear term + (n_freq - 1) sin terms -> n_freq lanes.
    lin = time @ params["t2v_w0"] + params["t2v_b0"]              # (N, T, 1)
    per = jnp.sin(time @ params["t2v_w"] + params["t2v_b"])       # (N, T, nf-1)
    enc = jnp.concatenate([lin, per], axis=-1)                    # (N, T, nf)

    n, t, d = num.shape
    nt = n * t
    num2d = num.reshape(nt, d).astype(io_dtype)
    enc2d = enc.reshape(nt, n_frequencies).astype(io_dtype)

    out2d = ste_dense_pallas(num2d, enc2d, params["w1"], params["b1"],
                             params["w2"], params["b2"],
                             t_nt=t_nt, out_dtype=out_dtype)       # (NT, d*Ho)
    # (NT, d*Ho) is bit-identical (row-major) to (N, T*d, Ho): free reshape.
    return out2d.reshape(n, t * d, -1)


# pure-JAX reference (mirrors the PyTorch module's concat formulation)
def st_embedding_reference(inputs, params, *, time_idx, feature_idx, n_frequencies):
    time = inputs[:, :, jnp.array(time_idx)]
    num = inputs[:, :, jnp.array(feature_idx)]
    lin = time @ params["t2v_w0"] + params["t2v_b0"]
    per = jnp.sin(time @ params["t2v_w"] + params["t2v_b"])
    enc = jnp.concatenate([lin, per], axis=-1)
    n, t, d = num.shape
    k = 1 + n_frequencies
    x = jnp.concatenate(
        [num[..., None],
         jnp.broadcast_to(enc[:, :, None, :], (n, t, d, n_frequencies))],
        axis=-1).reshape(n * t * d, k)
    h = x @ params["w1"] + params["b1"]
    h = 0.5 * h * (1.0 + lax.erf(h * jnp.float32(0.7071067811865476)))
    o = h @ params["w2"] + params["b2"]
    return o.reshape(n, t * d, -1)


def _orthogonal(key, shape):
    """Orthogonal init that also handles fat matrices (rows < cols),
    mimicking torch.nn.init.orthogonal_ (QR of the transpose)."""
    rows, cols = shape
    big, small = max(rows, cols), min(rows, cols)
    a = jax.random.normal(key, (big, small), dtype=jnp.float32)
    q, r = jnp.linalg.qr(a)                       # (big, small), orthonormal cols
    q = q * jnp.sign(jnp.diagonal(r))[None, :]    # deterministic sign
    if rows < cols:
        q = q.T                                   # (rows, cols) orthonormal rows
    return q


def init_params(key, *, n_time, n_frequencies, output_dim):
    k0, k1, k2, k3, k4, k5, k6, k7 = jax.random.split(key, 8)
    k_in = 1 + n_frequencies
    return {
        # frozen time2vec parameters (stand-in for the pretrained checkpoint)
        "t2v_w0": jax.random.normal(k0, (n_time, 1), jnp.float32),
        "t2v_b0": jax.random.normal(k1, (1,), jnp.float32),
        "t2v_w": jax.random.normal(k2, (n_time, n_frequencies - 1), jnp.float32),
        "t2v_b": jax.random.normal(k3, (n_frequencies - 1,), jnp.float32),
        # dense layers, stored as (in, out); PyTorch stores (out, in)
        "w1": _orthogonal(k4, (k_in, output_dim)),
        "b1": jax.random.normal(k5, (1, output_dim), jnp.float32) * 0.01,
        "w2": _orthogonal(k6, (output_dim, output_dim)),
        "b2": jax.random.normal(k7, (1, output_dim), jnp.float32) * 0.01,
    }


if __name__ == "__main__":
    # small, module-consistent shapes
    N, T, input_dim = 2, 8, 4
    time_idx = [0]
    ignore_cols = []
    n_frequencies = 16
    output_dim = 32
    feature_idx = [i for i in range(input_dim)
                   if i not in time_idx and i not in ignore_cols]   # -> [1, 2, 3]

    key = jax.random.PRNGKey(0)
    k_in, k_p = jax.random.split(key)
    inputs = jax.random.normal(k_in, (N, T, input_dim), dtype=jnp.float32)
    params = init_params(k_p, n_time=len(time_idx),
                         n_frequencies=n_frequencies, output_dim=output_dim)
    assert params["w1"].shape == (1 + n_frequencies, output_dim)

    ref = st_embedding_reference(inputs, params, time_idx=time_idx,
                                 feature_idx=feature_idx,
                                 n_frequencies=n_frequencies)

    # f32 path (strict check)
    fwd = functools.partial(st_embedding_forward,
                            time_idx=time_idx, feature_idx=feature_idx,
                            n_frequencies=n_frequencies)
    out = jax.block_until_ready(jax.jit(fwd)(inputs, params))
    assert out.shape == (N, T * len(feature_idx), output_dim)
    assert jnp.allclose(out, ref, atol=1e-3, rtol=1e-3), \
        float(jnp.max(jnp.abs(out - ref)))

    # bf16-I/O path (halves HBM traffic; loose tolerance by construction)
    fwd_bf16 = functools.partial(st_embedding_forward,
                                 time_idx=time_idx, feature_idx=feature_idx,
                                 n_frequencies=n_frequencies,
                                 io_dtype=jnp.bfloat16, out_dtype=jnp.bfloat16)
    out_bf16 = jax.block_until_ready(jax.jit(fwd_bf16)(inputs, params))
    assert out_bf16.shape == out.shape
    assert jnp.allclose(out_bf16.astype(jnp.float32), ref, atol=0.25, rtol=0.1)

    print("KERNEL_OK")
</pallas_src>

<mosaic_0001>
module attributes {stable_mosaic.version = 11 : i64} {
  func.func @_ste_mlp_kernel(%arg0: i32, %arg1: memref<8x3xf32, #tpu.memory_space<vmem>>, %arg2: memref<8x16xf32, #tpu.memory_space<vmem>>, %arg3: memref<1x32xf32, #tpu.memory_space<vmem>>, %arg4: memref<16x32xf32, #tpu.memory_space<vmem>>, %arg5: memref<1x32xf32, #tpu.memory_space<vmem>>, %arg6: memref<32x32xf32, #tpu.memory_space<vmem>>, %arg7: memref<1x32xf32, #tpu.memory_space<vmem>>, %arg8: memref<8x96xf32, #tpu.memory_space<vmem>>) attributes {dimension_semantics = [#tpu.dimension_semantics<parallel>], iteration_bounds = array<i64: 2>, scalar_prefetch = 0 : i64, scratch_operands = 0 : i64, tpu.core_type = #tpu.core_type<tc>, window_params = [{transform_indices = @transform_0, window_bounds = array<i64: 8, 3>}, {transform_indices = @transform_1, window_bounds = array<i64: 8, 16>}, {pipeline_mode = #tpu.pipeline_mode<synchronous>, transform_indices = @transform_2, window_bounds = array<i64: 1, 32>}, {pipeline_mode = #tpu.pipeline_mode<synchronous>, transform_indices = @transform_3, window_bounds = array<i64: 16, 32>}, {pipeline_mode = #tpu.pipeline_mode<synchronous>, transform_indices = @transform_4, window_bounds = array<i64: 1, 32>}, {pipeline_mode = #tpu.pipeline_mode<synchronous>, transform_indices = @transform_5, window_bounds = array<i64: 32, 32>}, {pipeline_mode = #tpu.pipeline_mode<synchronous>, transform_indices = @transform_6, window_bounds = array<i64: 1, 32>}, {transform_indices = @transform_7, window_bounds = array<i64: 8, 96>}]} {
    %c0 = arith.constant 0 : index
    %c0_0 = arith.constant 0 : index
    %0 = vector.load %arg1[%c0, %c0_0] : memref<8x3xf32, #tpu.memory_space<vmem>>, vector<8x3xf32>
    %c0_1 = arith.constant 0 : index
    %c0_2 = arith.constant 0 : index
    %1 = vector.load %arg2[%c0_1, %c0_2] : memref<8x16xf32, #tpu.memory_space<vmem>>, vector<8x16xf32>
    %c0_3 = arith.constant 0 : index
    %c0_4 = arith.constant 0 : index
    %2 = vector.load %arg3[%c0_3, %c0_4] : memref<1x32xf32, #tpu.memory_space<vmem>>, vector<1x32xf32>
    %c0_5 = arith.constant 0 : index
    %c0_6 = arith.constant 0 : index
    %3 = vector.load %arg6[%c0_5, %c0_6] : memref<32x32xf32, #tpu.memory_space<vmem>>, vector<32x32xf32>
    %c0_7 = arith.constant 0 : index
    %c0_8 = arith.constant 0 : index
    %4 = vector.load %arg7[%c0_7, %c0_8] : memref<1x32xf32, #tpu.memory_space<vmem>>, vector<1x32xf32>
    %c0_9 = arith.constant 0 : index
    %c0_10 = arith.constant 0 : index
    %5 = vector.load %arg4[%c0_9, %c0_10] : memref<16x32xf32, #tpu.memory_space<vmem>>, vector<16x32xf32>
    %cst = arith.constant dense<0.000000e+00> : vector<8x32xf32>
    %6 = tpu.matmul %1, %5, %cst {dimension_numbers = #tpu.dot_dimension_numbers<[1], [0], [0], [1], [0, 0, 1, 1], [], []>} : vector<8x16xf32>, vector<16x32xf32>, vector<8x32xf32> -> vector<8x32xf32>
    %c0_11 = arith.constant 0 : index
    %c0_12 = arith.constant 0 : index
    %7 = vector.load %arg5[%c0_11, %c0_12] : memref<1x32xf32, #tpu.memory_space<vmem>>, vector<1x32xf32>
    %8 = vector.broadcast %7 : vector<1x32xf32> to vector<8x32xf32>
    %9 = arith.addf %6, %8 : vector<8x32xf32>
    %10 = vector.extract_strided_slice %0 {offsets = [0, 0], sizes = [8, 1], strides = [1, 1]} : vector<8x3xf32> to vector<8x1xf32>
    %11 = vector.broadcast %10 : vector<8x1xf32> to vector<8x32xf32>
    %12 = vector.broadcast %2 : vector<1x32xf32> to vector<8x32xf32>
    %13 = arith.mulf %11, %12 : vector<8x32xf32>
    %14 = arith.addf %13, %9 : vector<8x32xf32>
    %cst_13 = arith.constant 5.000000e-01 : f32
    %15 = vector.broadcast %cst_13 : f32 to vector<8x32xf32>
    %16 = arith.mulf %15, %14 : vector<8x32xf32>
    %cst_14 = arith.constant 0.707106769 : f32
    %17 = vector.broadcast %cst_14 : f32 to vector<8x32xf32>
    %18 = arith.mulf %14, %17 : vector<8x32xf32>
    %19 = math.erf %18 : vector<8x32xf32>
    %cst_15 = arith.constant 1.000000e+00 : f32
    %20 = vector.broadcast %cst_15 : f32 to vector<8x32xf32>
    %21 = arith.addf %20, %19 : vector<8x32xf32>
    %22 = arith.mulf %16, %21 : vector<8x32xf32>
    %cst_16 = arith.constant dense<0.000000e+00> : vector<8x32xf32>
    %23 = tpu.matmul %22, %3, %cst_16 {dimension_numbers = #tpu.dot_dimension_numbers<[1], [0], [0], [1], [0, 0, 1, 1], [], []>} : vector<8x32xf32>, vector<32x32xf32>, vector<8x32xf32> -> vector<8x32xf32>
    %24 = vector.broadcast %4 : vector<1x32xf32> to vector<8x32xf32>
    %25 = arith.addf %23, %24 : vector<8x32xf32>
    %c0_17 = arith.constant 0 : index
    %c0_18 = arith.constant 0 : index
    %26 = vector.load %arg8[%c0_17, %c0_18] : memref<8x96xf32, #tpu.memory_space<vmem>>, vector<8x32xf32>
    tpu.vector_store %arg8[%c0_17, %c0_18], %25 {strides = array<i32>} : memref<8x96xf32, #tpu.memory_space<vmem>>, vector<8x32xf32>,
    %27 = vector.extract_strided_slice %0 {offsets = [0, 1], sizes = [8, 1], strides = [1, 1]} : vector<8x3xf32> to vector<8x1xf32>
    %28 = vector.broadcast %27 : vector<8x1xf32> to vector<8x32xf32>
    %29 = vector.broadcast %2 : vector<1x32xf32> to vector<8x32xf32>
    %30 = arith.mulf %28, %29 : vector<8x32xf32>
    %31 = arith.addf %30, %9 : vector<8x32xf32>
    %cst_19 = arith.constant 5.000000e-01 : f32
    %32 = vector.broadcast %cst_19 : f32 to vector<8x32xf32>
    %33 = arith.mulf %32, %31 : vector<8x32xf32>
    %cst_20 = arith.constant 0.707106769 : f32
    %34 = vector.broadcast %cst_20 : f32 to vector<8x32xf32>
    %35 = arith.mulf %31, %34 : vector<8x32xf32>
    %36 = math.erf %35 : vector<8x32xf32>
    %cst_21 = arith.constant 1.000000e+00 : f32
    %37 = vector.broadcast %cst_21 : f32 to vector<8x32xf32>
    %38 = arith.addf %37, %36 : vector<8x32xf32>
    %39 = arith.mulf %33, %38 : vector<8x32xf32>
    %cst_22 = arith.constant dense<0.000000e+00> : vector<8x32xf32>
    %40 = tpu.matmul %39, %3, %cst_22 {dimension_numbers = #tpu.dot_dimension_numbers<[1], [0], [0], [1], [0, 0, 1, 1], [], []>} : vector<8x32xf32>, vector<32x32xf32>, vector<8x32xf32> -> vector<8x32xf32>
    %41 = vector.broadcast %4 : vector<1x32xf32> to vector<8x32xf32>
    %42 = arith.addf %40, %41 : vector<8x32xf32>
    %c0_23 = arith.constant 0 : index
    %c32 = arith.constant 32 : index
    %43 = vector.load %arg8[%c0_23, %c32] : memref<8x96xf32, #tpu.memory_space<vmem>>, vector<8x32xf32>
    tpu.vector_store %arg8[%c0_23, %c32], %42 {strides = array<i32>} : memref<8x96xf32, #tpu.memory_space<vmem>>, vector<8x32xf32>,
    %44 = vector.extract_strided_slice %0 {offsets = [0, 2], sizes = [8, 1], strides = [1, 1]} : vector<8x3xf32> to vector<8x1xf32>
    %45 = vector.broadcast %44 : vector<8x1xf32> to vector<8x32xf32>
    %46 = vector.broadcast %2 : vector<1x32xf32> to vector<8x32xf32>
    %47 = arith.mulf %45, %46 : vector<8x32xf32>
    %48 = arith.addf %47, %9 : vector<8x32xf32>
    %cst_24 = arith.constant 5.000000e-01 : f32
    %49 = vector.broadcast %cst_24 : f32 to vector<8x32xf32>
    %50 = arith.mulf %49, %48 : vector<8x32xf32>
    %cst_25 = arith.constant 0.707106769 : f32
    %51 = vector.broadcast %cst_25 : f32 to vector<8x32xf32>
    %52 = arith.mulf %48, %51 : vector<8x32xf32>
    %53 = math.erf %52 : vector<8x32xf32>
    %cst_26 = arith.constant 1.000000e+00 : f32
    %54 = vector.broadcast %cst_26 : f32 to vector<8x32xf32>
    %55 = arith.addf %54, %53 : vector<8x32xf32>
    %56 = arith.mulf %50, %55 : vector<8x32xf32>
    %cst_27 = arith.constant dense<0.000000e+00> : vector<8x32xf32>
    %57 = tpu.matmul %56, %3, %cst_27 {dimension_numbers = #tpu.dot_dimension_numbers<[1], [0], [0], [1], [0, 0, 1, 1], [], []>} : vector<8x32xf32>, vector<32x32xf32>, vector<8x32xf32> -> vector<8x32xf32>
    %58 = vector.broadcast %4 : vector<1x32xf32> to vector<8x32xf32>
    %59 = arith.addf %57, %58 : vector<8x32xf32>
    %c0_28 = arith.constant 0 : index
    %c64 = arith.constant 64 : index
    %60 = vector.load %arg8[%c0_28, %c64] : memref<8x96xf32, #tpu.memory_space<vmem>>, vector<8x32xf32>
    tpu.vector_store %arg8[%c0_28, %c64], %59 {strides = array<i32>} : memref<8x96xf32, #tpu.memory_space<vmem>>, vector<8x32xf32>,
    return
  }
  func.func @transform_0(%arg0: i32) -> (i32, i32) {
    %c0_i32 = arith.constant 0 : i32
    %c0_i32_0 = arith.constant 0 : i32
    return %arg0, %c0_i32 : i32, i32
  }
  func.func @transform_1(%arg0: i32) -> (i32, i32) {
    %c0_i32 = arith.constant 0 : i32
    %c0_i32_0 = arith.constant 0 : i32
    return %arg0, %c0_i32 : i32, i32
  }
  func.func @transform_2(%arg0: i32) -> (i32, i32) {
    %c0_i32 = arith.constant 0 : i32
    %c0_i32_0 = arith.constant 0 : i32
    %c0_i32_1 = arith.constant 0 : i32
    return %c0_i32, %c0_i32_0 : i32, i32
  }
  func.func @transform_3(%arg0: i32) -> (i32, i32) {
    %c0_i32 = arith.constant 0 : i32
    %c0_i32_0 = arith.constant 0 : i32
    %c0_i32_1 = arith.constant 0 : i32
    return %c0_i32, %c0_i32_0 : i32, i32
  }
  func.func @transform_4(%arg0: i32) -> (i32, i32) {
    %c0_i32 = arith.constant 0 : i32
    %c0_i32_0 = arith.constant 0 : i32
    %c0_i32_1 = arith.constant 0 : i32
    return %c0_i32, %c0_i32_0 : i32, i32
  }
  func.func @transform_5(%arg0: i32) -> (i32, i32) {
    %c0_i32 = arith.constant 0 : i32
    %c0_i32_0 = arith.constant 0 : i32
    %c0_i32_1 = arith.constant 0 : i32
    return %c0_i32, %c0_i32_0 : i32, i32
  }
  func.func @transform_6(%arg0: i32) -> (i32, i32) {
    %c0_i32 = arith.constant 0 : i32
    %c0_i32_0 = arith.constant 0 : i32
    %c0_i32_1 = arith.constant 0 : i32
    return %c0_i32, %c0_i32_0 : i32, i32
  }
  func.func @transform_7(%arg0: i32) -> (i32, i32) {
    %c0_i32 = arith.constant 0 : i32
    %c0_i32_0 = arith.constant 0 : i32
    return %arg0, %c0_i32 : i32, i32
  }
}

</mosaic_0001>

<bundles_post_ra>
// kernel: st_embedding_forward.1
= control target key start
LH: loop header
LB: loop body
LE: loop exit
PB: predicated region body
PF: predicated region fallthrough
CT: control target
= control target key end

     0   :  { %s904_s24 = smov 0   ;;  %s975_s0 = inlined_call_operand.vmem [shape: f32[16,3], index: 0, kind: input, shape index: {}]   ;;  %s976_s1 = inlined_call_operand.vmem [shape: f32[16,16], index: 1, kind: input, shape index: {}]   ;;  %s977_s2 = inlined_call_operand.vmem [shape: f32[1,32], index: 2, kind: input, shape index: {}]   ;;  %s978_s3 = inlined_call_operand.vmem [shape: f32[16,32], index: 3, kind: input, shape index: {}]   ;;  %s979_s4 = inlined_call_operand.vmem [shape: f32[1,32], index: 4, kind: input, shape index: {}]   ;;  %s980_s5 = inlined_call_operand.vmem [shape: f32[32,32], index: 5, kind: input, shape index: {}]   ;;  %s981_s6 = inlined_call_operand.vmem [shape: f32[1,32], index: 6, kind: input, shape index: {}]   ;;  %s982_s7 = inlined_call_operand.vmem [shape: f32[16,96], index: 7, kind: output, shape index: {}]  }
   0x1 LB: > { %s726_s25 = sadd.s32 4294967295, %s854_s24   ;;  %p730_p0 = scmp.ge.s32.totalorder %s854_s24, 1  ;;  %s854_s24 = sphi %s904_s24, %s17_s24  }
   0x2   : > { %p245_p1 = scmp.lt.s32.totalorder %s854_s24, 3 }
   0x4   : > { %p246_p2 = pnand %p730_p0, %p245_p1 }
   0x5   : > { %v299_v0 = vld [vmem:[%s978_s3] sm:$0xff] (!%p246_p2)  ;;  %v300_v1 = vld [vmem:[%s978_s3 + $0x8] sm:$0xff] (!%p246_p2)  ;;  %p279_p3 = scmp.lt.s32.totalorder (!%p246_p2), %s726_s25, 1  ;;  %v856_v2 = vmov (!%p246_p2), 0.0|0.0   ;;  %vm857_vm0 = vmmov (!%p246_p2), 0   ;;  %v858_v4 = vmov (!%p246_p2), 0.0  }
   0x6   : > { %249 = sbr.rel (%p246_p2) target bundleno = 588 (0x24c), region = 48  ;;  %801 = vmatprep.subr.bf16.mxu0 (!%p246_p2), %v856_v2  ;;  %v802_v3 = vpack.c.bf16 (!%p246_p2), %v300_v1, %v299_v0  ;;  %765 = vmatprep.mubr.msk.f32.mxu0 (!%p246_p2), %vm857_vm0, %v858_v4  ;;  %v859_v5 = vmov (!%p246_p2), 0   ;;  %v860_v6 = vmov (!%p246_p2), 2   ;;  %vm308_vm1 = vcmask (!%p246_p2), 130048   ;;  %v294_v10 = vld [vmem:[%s980_s5] sm:$0xff] (!%p246_p2)  ;;  %v295_v11 = vld [vmem:[%s980_s5 + $0x8] sm:$0xff] (!%p246_p2) }
   0x7   : > { %838 = vset.pattern.permute.xlu0 (!%p246_p2), %v859_v5  ;;  %840 = vset.pattern.permute.xlu1 (!%p246_p2), %v860_v6  ;;  %v861_v9 = vmov (!%p246_p2), 1   ;;  %v805_v12 = vpack.c.bf16 (!%p246_p2), %v295_v11, %v294_v10  ;;  %v296_v13 = vld [vmem:[%s980_s5 + $0x10] sm:$0xff] (!%p246_p2)  ;;  %v297_v14 = vld [vmem:[%s980_s5 + $0x18] sm:$0xff] (!%p246_p2)  ;;  %v736_v19 = vld [vmem:[%s977_s2] ss:$0 sm:$0xff] (!%p246_p2)  ;;  %vm406_vm2 = vcmask (!%p246_p2), 261120  }
   0x8   : > { %803 = vmatpush3.bf16.msra.mxu0 (!%p246_p2), %v802_v3  ;;  %804 = vmatprep.subr.bf16.mxu1 (!%p246_p2), %v856_v2  ;;  %v808_v15 = vpack.c.bf16 (!%p246_p2), %v297_v14, %v296_v13  ;;  %v734_v20 = vld [vmem:[%s979_s4] ss:$0 sm:$0xff] (!%p246_p2)  ;;  %s863_s11 = smov (!%p246_p2), 64   ;;  %vm569_vm3 = vcmask (!%p246_p2), 523520   ;;  %vm659_vm4 = vcmask (!%p246_p2), 785920  }
   0x9   : > { %810 = vmatprep.subr.bf16.mxu0 (!%p246_p2), %v856_v2  ;;  %776 = vmatprep.mubr.msk.f32.mxu1 (!%p246_p2), %vm857_vm0, %v858_v4  ;;  %v737_v45 = vld [vmem:[%s981_s6] ss:$0 sm:$0xff] (!%p246_p2) }
   0xa   : > { %806 = vmatpush3.bf16.msra.mxu1 (!%p246_p2), %v805_v12 }
   0xb   : > { %807 = vmatprep.subr.bf16.mxu1 (!%p246_p2), %v856_v2 }
   0xd   : > { %s984_s25 = smov (!%p279_p3, %s726_s25), 1 }
   0xe   : > { %s922_s30 = sshll.u32 %s984_s25, 3  ;;  %809 = vmatpush3.bf16.msra.mxu1 %v808_v15 }
   0xf   : > { %s286_s10 = scalar_lea.vmem %s976_s1, %s922_s30  ;;  %s282_s13 = scalar_lea.vmem %s975_s0, %s922_s30  ;;  %816 = vmatprep.subr.bf16.mxu1 %v856_v2 }
  0x10   : > { %v292_v7 = vld [vmem:[%s286_s10] sm:$0xff]  ;;  %s290_s9 = scalar_lea.vmem %s982_s7, %s922_s30  ;;  %s862_s10 = smov 32  }
  0x11   : > { %v291_v8 = vld [vmem:[%s282_s13] sm:$0xff]  ;;  %766 = vmatmul.mubr.msk.f32.vlgmr.msra.gmra.mrb[0].mxu0 %vm308_vm1, %v292_v7 }
  0x12   : > { %384 = vperm.xlu0 %838, %v291_v8   ;;  %572 = vperm.xlu1 %840, %v291_v8  }
  0x13   : > { %787 = vmatprep.mubr.msk.f32.mxu0 %vm857_vm0, %v858_v4  ;;  %812 = vmatpush3.bf16.msra.mxu0 %v805_v12 }
  0x14   : > { %813 = vmatprep.subr.bf16.mxu0 %v856_v2 }
  0x16   : > { %839 = vset.pattern.permute.xlu0 %v861_v9 }
  0x17   : > { %482 = vperm.xlu0 %839, %v291_v8   ;;  %815 = vmatpush3.bf16.msra.mxu0 %v808_v15 }
  0x1b   : > { %841 = vset.pattern.permute.xlu0 %v860_v6 }
  0x91   : > { %v385_v16 = vpop.permute.xlu0 %384  ;;  %v573_v17 = vpop.permute.xlu1 %572 }
  0x92   : > { %v575_v21 = vmul.f32 %v736_v19, %v573_v17  ;;  %v393_v24 = vmul.f32 %v736_v19, %v385_v16 }
  0x96   : > { %v483_v18 = vpop.permute.xlu0 %482 }
  0x97   : > { %v485_v22 = vmul.f32 %v736_v19, %v483_v18 }
  0xe4   : > { %v378_v23 = vpop.f32.mrb[0].mxu0 }
  0xe5   : > { %v379_v25 = vadd.f32 %v734_v20, %v378_v23  ;;  %v767_v26 = vpop.f32.mrb[1].mxu0 }
  0xe7   : > { %v394_v27 = vadd.f32 %v393_v24, %v379_v25  ;;  %v576_v28 = vadd.f32 %v575_v21, %v379_v25  ;;  %v486_v29 = vadd.f32 %v485_v22, %v379_v25 }
  0xe9   : > { %v396_v30 = vmul.f32 0.70710677, %v394_v27  ;;  %v488_v31 = vmul.f32 0.70710677, %v486_v29  ;;  %v578_v32 = vmul.f32 0.70710677, %v576_v28 }
  0xea   : > { %v395_v34 = vmul.f32 0.5, %v394_v27  ;;  %v487_v37 = vmul.f32 0.5, %v486_v29  ;;  %v577_v43 = vmul.f32 0.5, %v576_v28 }
  0xeb   : > { %842 = verf.f32 %v396_v30 }
  0xec   : > { %844 = verf.f32 %v488_v31 }
  0xed   : > { %846 = verf.f32 %v578_v32 }
  0xf5   : > { %v843_v33 = vpop.eup %842 }
  0xf6   : > { %v398_v35 = vadd.f32 1.0, %v843_v33  ;;  %v845_v36 = vpop.eup %844 }
  0xf7   : > { %v490_v38 = vadd.f32 1.0, %v845_v36  ;;  %v847_v40 = vpop.eup %846 }
  0xf8   : > { %v399_v39 = vmul.f32 %v398_v35, %v395_v34  ;;  %v580_v42 = vadd.f32 1.0, %v847_v40 }
  0xf9   : > { %v491_v41 = vmul.f32 %v490_v38, %v487_v37 }
  0xfa   : > { %777 = vmatmul.mubr.msk.f32.vlgmr.msra.gmra.mrb[0].mxu1 %vm406_vm2, %v399_v39  ;;  %v581_v44 = vmul.f32 %v580_v42, %v577_v43 }
  0xfb   : > { %818 = vmatpush3.bf16.msra.mxu1 %v805_v12  ;;  %798 = vmatprep.mubr.msk.f32.mxu1 %vm857_vm0, %v858_v4 }
  0xfc   : > { %788 = vmatmul.mubr.msk.f32.vlgmr.msra.gmra.mrb[2].mxu0 %vm406_vm2, %v491_v41  ;;  %819 = vmatprep.subr.bf16.mxu1 %v856_v2 }
  0xff   : > { %821 = vmatpush3.bf16.msra.mxu1 %v808_v15 }
 0x102   : > { %799 = vmatmul.mubr.msk.f32.vlgmr.msra.gmra.mrb[2].mxu1 %vm406_vm2, %v581_v44 }
 0x1cd   : > { %v476_v46 = vpop.f32.mrb[0].mxu1 }
 0x1ce   : > { %v477_v47 = vadd.f32 %v737_v45, %v476_v46  ;;  %v778_v48 = vpop.f32.mrb[1].mxu1 }
 0x1cf   : > { %v561_v49 = vpop.f32.mrb[2].mxu0 }
 0x1d0   : > { %480 = vst.msk [vmem:[%s290_s9] sm:$0xff] %vm406_vm2, %v477_v47  ;;  %v562_v50 = vadd.f32 %v737_v45, %v561_v49  ;;  %v789_v51 = vpop.f32.mrb[3].mxu0 }
 0x1d2   : > { %566 = vrot.lane.b32.xlu1 %v562_v50, %s862_s10 }
 0x1d5   : > { %v651_v52 = vpop.f32.mrb[2].mxu1 }
 0x1d6   : > { %v652_v53 = vadd.f32 %v737_v45, %v651_v52  ;;  %v800_v54 = vpop.f32.mrb[3].mxu1 }
 0x1d8   : > { %656 = vrot.lane.b32.xlu1 %v652_v53, %s863_s11 }
 0x244   : > { %v567_v55 = vpop.permute.xlu1 %566 }
 0x245   : > { %570 = vst.msk [vmem:[%s290_s9] sm:$0xff] %vm569_vm3, %v567_v55 }
 0x24a   : > { %v657_v56 = vpop.permute.xlu1 %656 }
 0x24b   : > { %660 = vst.msk [vmem:[%s290_s9] sm:$0xff] %vm659_vm4, %v657_v56 }
 0x24c PF: > { %s17_s24 = sadd.s32 1, %s854_s24  }
 0x24d   : > { %p14_p4 = scmp.ge.s32.totalorder %s17_s24, 4  }
 0x24f   :  { %16 = sbr.rel (!%p14_p4) target bundleno = 1 (0x1), region = 81 }

</bundles_post_ra>
